<compile_context>
chip_gen: v6e
topology: v6e:2x2x1
jax: 0.10.0
libtpu: 0.0.40
codegen_flags: <defaults>
</compile_context>

<pallas_src>
import math

import jax
import jax.numpy as jnp
from jax.experimental import pallas as pl
from jax.experimental.pallas import tpu as pltpu


def _round_up(x, m):
    return ((x + m - 1) // m) * m


def _make_equal_linear_kernel(scale, lr_mul, activation):
    """Kernel body with the static scalars closed over."""
    neg_slope = 0.2
    act_gain = math.sqrt(2.0)  # fused_leaky_relu output gain

    def kernel(x_ref, w_ref, b_ref, o_ref):
        # x_ref: (tm, Kp)  row tile of the (padded) flattened input
        # w_ref: (Kp, tn)  column tile of the (padded, transposed) weight
        # b_ref: (1, tn)   bias tile
        # o_ref: (tm, tn)  output tile
        acc = jnp.dot(x_ref[...], w_ref[...],
                      preferred_element_type=jnp.float32)
        # scale distributes over the matmul -> apply once to the accumulator.
        acc = acc * scale + b_ref[...].astype(jnp.float32) * lr_mul
        if activation is not None:  # fused_leaky_relu epilogue
            acc = jnp.where(acc >= 0, acc, acc * neg_slope) * act_gain
        o_ref[...] = acc.astype(o_ref.dtype)

    return kernel


def equal_linear(x, weight, bias=None, *, lr_mul=1.0, activation=None,
                 tm=256, tn=256):
    """Forward pass of EqualLinear.

    Matches:
      out = F.linear(x, weight * scale, bias=bias * lr_mul)            (no act)
      out = fused_leaky_relu(F.linear(x, weight * scale), bias*lr_mul) (act)
    where scale = 1/sqrt(in_dim) * lr_mul.
    """
    out_dim, in_dim = weight.shape
    scale = (1.0 / math.sqrt(in_dim)) * lr_mul

    orig_shape = x.shape
    assert orig_shape[-1] == in_dim, (orig_shape, in_dim)
    m = 1
    for s in orig_shape[:-1]:
        m *= s
    x2 = x.reshape(m, in_dim)

    # Pad K and N to multiples of 128 for lane-dense loads/stores; pad M to a
    # multiple of the row tile so the grid divides evenly.
    k_pad = _round_up(in_dim, 128)
    n_pad = _round_up(out_dim, 128)
    tn = tn if n_pad >= tn else n_pad
    n_pad = _round_up(n_pad, tn)
    m_pad = _round_up(m, 8)
    tm = tm if m_pad >= tm else m_pad
    m_pad = _round_up(m_pad, tm)

    x_p = jnp.pad(x2, ((0, m_pad - m), (0, k_pad - in_dim)))
    # (out_dim, in_dim) -> (in_dim, out_dim), zero-padded.
    w_p = jnp.pad(jnp.transpose(weight, (1, 0)),
                  ((0, k_pad - in_dim), (0, n_pad - out_dim)))
    b = bias if bias is not None else jnp.zeros((out_dim,), x.dtype)
    b_p = jnp.pad(b.reshape(1, out_dim), ((0, 0), (0, n_pad - out_dim)))

    grid = (m_pad // tm, n_pad // tn)
    kernel = _make_equal_linear_kernel(scale, float(lr_mul), activation)

    out_p = pl.pallas_call(
        kernel,
        out_shape=jax.ShapeDtypeStruct((m_pad, n_pad), x.dtype),
        grid_spec=pltpu.PrefetchScalarGridSpec(
            num_scalar_prefetch=0,
            grid=grid,
            in_specs=[
                pl.BlockSpec((tm, k_pad), lambda i, j: (i, 0)),   # x row tile
                pl.BlockSpec((k_pad, tn), lambda i, j: (0, j)),   # w col tile
                pl.BlockSpec((1, tn), lambda i, j: (0, j)),       # bias tile
            ],
            out_specs=pl.BlockSpec((tm, tn), lambda i, j: (i, j)),
        ),
        compiler_params=pltpu.CompilerParams(
            dimension_semantics=("parallel", "parallel"),
        ),
    )(x_p, w_p, b_p)

    out = out_p[:m, :out_dim]
    return out.reshape(orig_shape[:-1] + (out_dim,))


if __name__ == "__main__":
    # EqualLinear(in_dim=32, out_dim=32, bias=True, bias_init=0, lr_mul=1)
    batch, seq, in_dim, out_dim = 2, 8, 32, 32
    lr_mul = 1.0
    bias_init = 0.0

    key = jax.random.PRNGKey(0)
    k_x, k_w = jax.random.split(key)

    x = jax.random.normal(k_x, (batch, seq, in_dim), jnp.float32)
    # nn.Parameter(torch.randn(out_dim, in_dim).div_(lr_mul))
    weight = jax.random.normal(k_w, (out_dim, in_dim), jnp.float32) / lr_mul
    # nn.Parameter(torch.zeros(out_dim).fill_(bias_init))
    bias = jnp.full((out_dim,), bias_init, jnp.float32)

    scale = (1.0 / math.sqrt(in_dim)) * lr_mul

    # ---- activation=None path ----
    out = equal_linear(x, weight, bias, lr_mul=lr_mul, activation=None)
    out = jax.block_until_ready(out)
    ref = x @ (weight * scale).T + bias * lr_mul
    assert out.shape == ref.shape, (out.shape, ref.shape)
    assert jnp.allclose(out, ref, atol=1e-4, rtol=1e-4), float(
        jnp.max(jnp.abs(out - ref)))

    # ---- activation='fused_lrelu' path ----
    out_act = equal_linear(x, weight, bias, lr_mul=lr_mul,
                           activation="fused_lrelu")
    out_act = jax.block_until_ready(out_act)
    lin = x @ (weight * scale).T + bias * lr_mul
    ref_act = jnp.where(lin >= 0, lin, 0.2 * lin) * math.sqrt(2.0)
    assert jnp.allclose(out_act, ref_act, atol=1e-4, rtol=1e-4), float(
        jnp.max(jnp.abs(out_act - ref_act)))

    print("KERNEL_OK")
</pallas_src>

<mosaic_0001>
module attributes {stable_mosaic.version = 11 : i64} {
  func.func @kernel(%arg0: i32, %arg1: i32, %arg2: memref<16x128xf32, #tpu.memory_space<vmem>>, %arg3: memref<128x128xf32, #tpu.memory_space<vmem>>, %arg4: memref<1x128xf32, #tpu.memory_space<vmem>>, %arg5: memref<16x128xf32, #tpu.memory_space<vmem>>) attributes {dimension_semantics = [#tpu.dimension_semantics<parallel>, #tpu.dimension_semantics<parallel>], iteration_bounds = array<i64: 1, 1>, scalar_prefetch = 0 : i64, scratch_operands = 0 : i64, tpu.core_type = #tpu.core_type<tc>, window_params = [{transform_indices = @transform_0, window_bounds = array<i64: 16, 128>}, {transform_indices = @transform_1, window_bounds = array<i64: 128, 128>}, {transform_indices = @transform_2, window_bounds = array<i64: 1, 128>}, {transform_indices = @transform_3, window_bounds = array<i64: 16, 128>}]} {
    %c0 = arith.constant 0 : index
    %c0_0 = arith.constant 0 : index
    %0 = vector.load %arg2[%c0, %c0_0] : memref<16x128xf32, #tpu.memory_space<vmem>>, vector<16x128xf32>
    %c0_1 = arith.constant 0 : index
    %c0_2 = arith.constant 0 : index
    %1 = vector.load %arg3[%c0_1, %c0_2] : memref<128x128xf32, #tpu.memory_space<vmem>>, vector<128x128xf32>
    %cst = arith.constant dense<0.000000e+00> : vector<16x128xf32>
    %2 = tpu.matmul %0, %1, %cst {dimension_numbers = #tpu.dot_dimension_numbers<[1], [0], [0], [1], [0, 0, 1, 1], [], []>} : vector<16x128xf32>, vector<128x128xf32>, vector<16x128xf32> -> vector<16x128xf32>
    %cst_3 = arith.constant 0.176776692 : f32
    %3 = vector.broadcast %cst_3 : f32 to vector<16x128xf32>
    %4 = arith.mulf %2, %3 : vector<16x128xf32>
    %c0_4 = arith.constant 0 : index
    %c0_5 = arith.constant 0 : index
    %5 = vector.load %arg4[%c0_4, %c0_5] : memref<1x128xf32, #tpu.memory_space<vmem>>, vector<1x128xf32>
    %cst_6 = arith.constant 1.000000e+00 : f32
    %6 = vector.broadcast %cst_6 : f32 to vector<1x128xf32>
    %7 = arith.mulf %5, %6 : vector<1x128xf32>
    %8 = vector.broadcast %7 : vector<1x128xf32> to vector<16x128xf32>
    %9 = arith.addf %4, %8 : vector<16x128xf32>
    %c0_7 = arith.constant 0 : index
    %c0_8 = arith.constant 0 : index
    %10 = vector.load %arg5[%c0_7, %c0_8] : memref<16x128xf32, #tpu.memory_space<vmem>>, vector<16x128xf32>
    tpu.vector_store %arg5[%c0_7, %c0_8], %9 {strides = array<i32>} : memref<16x128xf32, #tpu.memory_space<vmem>>, vector<16x128xf32>,
    return
  }
  func.func @transform_0(%arg0: i32, %arg1: i32) -> (i32, i32) {
    %c0_i32 = arith.constant 0 : i32
    %c0_i32_0 = arith.constant 0 : i32
    return %arg0, %c0_i32 : i32, i32
  }
  func.func @transform_1(%arg0: i32, %arg1: i32) -> (i32, i32) {
    %c0_i32 = arith.constant 0 : i32
    %c0_i32_0 = arith.constant 0 : i32
    return %c0_i32, %arg1 : i32, i32
  }
  func.func @transform_2(%arg0: i32, %arg1: i32) -> (i32, i32) {
    %c0_i32 = arith.constant 0 : i32
    %c0_i32_0 = arith.constant 0 : i32
    return %c0_i32, %arg1 : i32, i32
  }
  func.func @transform_3(%arg0: i32, %arg1: i32) -> (i32, i32) {
    %c0_i32 = arith.constant 0 : i32
    return %arg0, %arg1 : i32, i32
  }
}

</mosaic_0001>

<bundles_post_ra>
// kernel: tpu_custom_call.1
= control target key start
LH: loop header
LB: loop body
LE: loop exit
PB: predicated region body
PF: predicated region fallthrough
CT: control target
= control target key end

     0   :  { %8 = vsyncpa [#allocation3], 0  ;;  %s338_s0 = inlined_call_operand.hbm [shape: f32[16,128], index: 0, kind: input, shape index: {}]   ;;  %s339_s1 = inlined_call_operand.hbm [shape: f32[128,128], index: 1, kind: input, shape index: {}]   ;;  %s340_s2 = inlined_call_operand.vmem [shape: f32[1,128], index: 2, kind: input, shape index: {}]   ;;  %s341_s3 = inlined_call_operand.hbm [shape: f32[16,128], index: 3, kind: output, shape index: {}]  }
   0x1   :  { %9 = vsyncpa [#allocation6], 0 }
   0x2   :  { %10 = vsyncpa [#allocation4], 0  ;;  %s292_s12 = smov [#allocation2]  }
   0x3   :  { %s16_s13 = sshll.u32 %s292_s12, 4  ;;  %s17_s13 = int_to_ptr.vmem [resolvable:$true] %s16_s13 }
   0x4   :  { %s234_s14 = scalar_lea.vmem %s17_s13, 256  ;;  %p239_p1 = scmp.lt.s32.totalorder %s17_s13, %s17_s13 }
   0x5   :  { %p235_p0 = scmp.ne.s32.totalorder %s17_s13, %s234_s14  ;;  %p240_p2 = scmp.lt.s32.totalorder %s234_s14, %s234_s14 }
   0x7   :  { %p241_p3 = por %p240_p2, %p239_p1 }
   0x9   :  { %p242_p4 = pnand %p241_p3, %p235_p0 }
   0xb   :  { %245 = shalt.err (!%p242_p4)
}
   0xc   :  { %s293_s15 = smov 128   ;;  %s294_s16 = smov 8  }
   0xd   :  { %22 = dma.hbm_to_vmem [thread:$0]  %s338_s0, 256, %s17_s13, [#allocation3], %s293_s15, %s293_s15, %s294_s16  }
   0xe   :  { %s295_s19 = smov [#allocation5]  }
   0xf   :  { %s28_s20 = sshll.u32 %s295_s19, 4  ;;  %s29_s20 = int_to_ptr.vmem [resolvable:$true] %s28_s20 }
  0x10   :  { %s254_s21 = scalar_lea.vmem %s29_s20, 2048  ;;  %p259_p6 = scmp.lt.s32.totalorder %s29_s20, %s29_s20 }
  0x11   :  { %p255_p5 = scmp.ne.s32.totalorder %s29_s20, %s254_s21  ;;  %p260_p7 = scmp.lt.s32.totalorder %s254_s21, %s254_s21 }
  0x13   :  { %p261_p8 = por %p260_p7, %p259_p6 }
  0x15   :  { %p262_p9 = pnand %p261_p8, %p255_p5 }
  0x17   :  { %265 = shalt.err (!%p262_p9)
}
  0x18   :  { %34 = dma.hbm_to_vmem [thread:$0]  %s339_s1, 2048, %s29_s20, [#allocation6], %s293_s15, %s293_s15, %s294_s16  }
  0x19   :  { %286 = dma.done.wait [#allocation3], 256  }
  0x1a   :  { %287 = vsyncadd [#allocation3], 4294967040 }
  0x1b   :  { %288 = dma.done.wait [#allocation6], 2048  }
  0x1c   :  { %289 = vsyncadd [#allocation6], 4294965248  ;;  %v60_v0 = vld [vmem:[#allocation5 + $0x78] sm:$0xff]  ;;  %v59_v1 = vld [vmem:[#allocation5 + $0x70] sm:$0xff]  ;;  %s296_s24 = smov [#allocation7]  }
  0x1d   :  { %186 = vmatprep.subr.mxu0 %v60_v0  ;;  %v58_v2 = vld [vmem:[#allocation5 + $0x68] sm:$0xff]  ;;  %v57_v3 = vld [vmem:[#allocation5 + $0x60] sm:$0xff]  ;;  %v43_v4 = vld [vmem:[#allocation2] sm:$0xff]  ;;  %s154_s25 = sshll.u32 %s296_s24, 4  ;;  %s155_s25 = int_to_ptr.vmem [resolvable:$true] %s154_s25 }
  0x1e   :  { %187 = vmatpush3.msra.mxu0 %v60_v0  ;;  %v56_v5 = vld [vmem:[#allocation5 + $0x58] sm:$0xff]  ;;  %218 = vmatprep.mubr.f32.mxu0 %v43_v4  ;;  %v55_v6 = vld [vmem:[#allocation5 + $0x50] sm:$0xff]  ;;  %v54_v7 = vld [vmem:[#allocation5 + $0x48] sm:$0xff]  ;;  %s266_s26 = scalar_lea.vmem %s155_s25, 256  ;;  %p271_p11 = scmp.lt.s32.totalorder %s155_s25, %s155_s25 }
  0x1f   :  { %188 = vmatprep.subr.mxu0 %v59_v1  ;;  %v53_v8 = vld [vmem:[#allocation5 + $0x40] sm:$0xff]  ;;  %v52_v9 = vld [vmem:[#allocation5 + $0x38] sm:$0xff]  ;;  %v51_v10 = vld [vmem:[#allocation5 + $0x30] sm:$0xff]  ;;  %p267_p10 = scmp.ne.s32.totalorder %s155_s25, %s266_s26  ;;  %p272_p12 = scmp.lt.s32.totalorder %s266_s26, %s266_s26 }
  0x20   :  { %189 = vmatpush3.msra.mxu0 %v59_v1  ;;  %v50_v11 = vld [vmem:[#allocation5 + $0x28] sm:$0xff]  ;;  %v49_v12 = vld [vmem:[#allocation5 + $0x20] sm:$0xff]  ;;  %v48_v13 = vld [vmem:[#allocation5 + $0x18] sm:$0xff] }
  0x21   :  { %190 = vmatprep.subr.mxu0 %v58_v2  ;;  %v47_v14 = vld [vmem:[#allocation5 + $0x10] sm:$0xff]  ;;  %v46_v15 = vld [vmem:[#allocation5 + $0x8] sm:$0xff]  ;;  %v45_v16 = vld [vmem:[#allocation5] sm:$0xff]  ;;  %p273_p13 = por %p272_p12, %p271_p11 }
  0x22   :  { %191 = vmatpush3.msra.mxu0 %v58_v2  ;;  %v44_v17 = vld [vmem:[#allocation2 + $0x8] sm:$0xff]  ;;  %v167_v19 = vld [vmem:[%s340_s2] ss:$0 sm:$0xff] }
  0x23   :  { %192 = vmatprep.subr.mxu0 %v57_v3  ;;  %p274_p0 = pnand %p273_p13, %p267_p10 }
  0x24   :  { %193 = vmatpush3.msra.mxu0 %v57_v3 }
  0x25   :  { %194 = vmatprep.subr.mxu0 %v56_v5 }
  0x26   :  { %195 = vmatpush3.msra.mxu0 %v56_v5 }
  0x27   :  { %196 = vmatprep.subr.mxu0 %v55_v6 }
  0x28   :  { %197 = vmatpush3.msra.mxu0 %v55_v6 }
  0x29   :  { %198 = vmatprep.subr.mxu0 %v54_v7 }
  0x2a   :  { %199 = vmatpush3.msra.mxu0 %v54_v7 }
  0x2b   :  { %200 = vmatprep.subr.mxu0 %v53_v8 }
  0x2c   :  { %201 = vmatpush3.msra.mxu0 %v53_v8 }
  0x2d   :  { %202 = vmatprep.subr.mxu0 %v52_v9 }
  0x2e   :  { %203 = vmatpush3.msra.mxu0 %v52_v9 }
  0x2f   :  { %204 = vmatprep.subr.mxu0 %v51_v10 }
  0x30   :  { %205 = vmatpush3.msra.mxu0 %v51_v10 }
  0x31   :  { %206 = vmatprep.subr.mxu0 %v50_v11 }
  0x32   :  { %207 = vmatpush3.msra.mxu0 %v50_v11 }
  0x33   :  { %208 = vmatprep.subr.mxu0 %v49_v12 }
  0x34   :  { %209 = vmatpush3.msra.mxu0 %v49_v12 }
  0x35   :  { %210 = vmatprep.subr.mxu0 %v48_v13 }
  0x36   :  { %211 = vmatpush3.msra.mxu0 %v48_v13 }
  0x37   :  { %212 = vmatprep.subr.mxu0 %v47_v14 }
  0x38   :  { %213 = vmatpush3.msra.mxu0 %v47_v14 }
  0x39   :  { %214 = vmatprep.subr.mxu0 %v46_v15 }
  0x3a   :  { %215 = vmatpush3.msra.mxu0 %v46_v15 }
  0x3b   :  { %216 = vmatprep.subr.mxu0 %v45_v16 }
  0x3c   :  { %217 = vmatpush3.msra.mxu0 %v45_v16 }
  0x3d   :  { %219 = vmatmul.mubr.f32.vlgmr.msra.gmra.mxu0 %v44_v17 }
  0xfd   :  { %v220_v18 = vpop.f32.mrf.mxu0 }
  0xfe   :  { %v137_v20 = vmul.f32 0.17677669, %v220_v18 }
  0xff   :  { %v127_v21 = vpop.f32.mrf.mxu0 }
 0x100   :  { %v146_v22 = vadd.f32 %v167_v19, %v137_v20  ;;  %v136_v23 = vmul.f32 0.17677669, %v127_v21 }
 0x102   :  { %148 = vst [vmem:[#allocation7 + $0x8] sm:$0xff] %v146_v22  ;;  %v145_v24 = vadd.f32 %v167_v19, %v136_v23 }
 0x104   :  { %147 = vst [vmem:[#allocation7] sm:$0xff] %v145_v24 }
 0x105   :  { %277 = shalt.err (!%p274_p0)
}
 0x106   :  { %160 = dma.vmem_to_hbm [thread:$0]  %s155_s25, 256, %s341_s3, [#allocation4], %s293_s15, %s293_s15, %s294_s16  }
 0x107   :  { %290 = dma.done.wait [#allocation4], 256  }
 0x108   :  { %291 = vsyncadd [#allocation4], 4294967040 }
 0x109   :  { %164 = vsyncpa [#allocation3], 1 }
 0x10a   :  { %165 = vsyncpa [#allocation6], 1 }
 0x10b   :  { %166 = vsyncpa [#allocation4], 1 }

</bundles_post_ra>
